<compile_context>
chip_gen: v7x
topology: tpu7x:2x2x1
jax: 0.10.0
libtpu: 0.0.40
codegen_flags: <defaults>
</compile_context>

<pallas_src>
import functools

import numpy as np
import jax
import jax.numpy as jnp
from jax.experimental import pallas as pl
from jax.experimental.pallas import tpu as pltpu

MARGIN = 0.5
MAX_CONTRASTIVE_LOSS = 3.0
LOSS_WEIGHT = 0.5

TILE_NB = 128   # base-row tile (sublane axis of the cos_sim tile)
TILE_NN = 256   # novel-row tile (lane axis); 128-multiple, fine on v5e/v6e/v7x


def _cosine_sim_kernel(base_ref, novel_ref, btrg_ref, ntrg_ref, out_ref):
    j = pl.program_id(1)

    @pl.when(j == 0)
    def _init():
        out_ref[...] = jnp.zeros_like(out_ref)

    # (tm, D) bf16 @ (D, tn) bf16 -> (tm, tn) f32 on the MXU.
    cos = jax.lax.dot_general(
        base_ref[...], novel_ref[...],
        dimension_numbers=(((1,), (0,)), ((), ())),
        preferred_element_type=jnp.float32)

    # Labels carry validity sentinels (base: -1e6, novel: -2e6), so `eq` is
    # only true for valid positive pairs.  Invalid / padded rows have zeroed
    # (normalized) features => cos == 0 => relu(0 - margin) == 0, so they
    # contribute nothing to the sum.
    eq = btrg_ref[...] == ntrg_ref[...]                      # (tm, tn) bool
    term = jnp.where(eq, 1.0 - cos, jnp.maximum(cos - MARGIN, 0.0))

    # Fold the (tm, tn) tile into one lane-dense (8, 128) vreg using pure
    # VALU adds on (8,128)-aligned slices (no cross-lane XLU reduce per
    # tile); accumulate across the Nn grid axis in the resident output block.
    tm, tn = term.shape
    acc = jnp.zeros((8, 128), jnp.float32)
    for r in range(tm // 8):
        for c in range(tn // 128):
            acc = acc + term[r * 8:(r + 1) * 8, c * 128:(c + 1) * 128]
    out_ref[...] += acc


def _round_up(x, m):
    return ((x + m - 1) // m) * m


@functools.partial(jax.jit, static_argnames=("num_classes",))
def cosine_sim_loss(base_bbox_pred, cls_score_pred, gt_base_bbox,
                    bbox_targets, classes_eq, num_classes):
    gt_i = gt_base_bbox.astype(jnp.int32)
    nt_i = bbox_targets.astype(jnp.int32)

    # `classes_eq is not None` branch of the PyTorch module.
    # TODO(synk): the classes_eq=None branch (base_pos uses `> num_classes`)
    # is not implemented here.
    base_valid = (gt_i >= 0) & (gt_i < num_classes)
    novel_valid = (nt_i >= 0) & (nt_i > num_classes)

    mapped = classes_eq.astype(jnp.int32)[
        jnp.clip(nt_i, 0, classes_eq.shape[0] - 1)]
    btrg = jnp.where(base_valid, gt_i, -1_000_000)        # base sentinel
    ntrg = jnp.where(novel_valid, mapped, -2_000_000)     # novel sentinel

    # Normalize rows once (O(Nb+Nn) rsqrt) and zero invalid rows so the
    # kernel's matmul directly yields cosine similarity (0 for invalid pairs).
    bf = base_bbox_pred.astype(jnp.float32)
    nf = cls_score_pred.astype(jnp.float32)
    b_inv = jax.lax.rsqrt(
        jnp.maximum(jnp.sum(bf * bf, axis=1, keepdims=True), 1e-16))
    n_inv = jax.lax.rsqrt(
        jnp.maximum(jnp.sum(nf * nf, axis=1, keepdims=True), 1e-16))
    b_n = (bf * b_inv * base_valid[:, None].astype(jnp.float32)
           ).astype(jnp.bfloat16)
    n_n = (nf * n_inv * novel_valid[:, None].astype(jnp.float32)
           ).astype(jnp.bfloat16)

    nb, d = b_n.shape
    nn = n_n.shape[0]
    nb_p = _round_up(nb, TILE_NB)
    nn_p = _round_up(nn, TILE_NN)
    nb_t = nb_p // TILE_NB
    nn_t = nn_p // TILE_NN

    base_p = jnp.pad(b_n, ((0, nb_p - nb), (0, 0)))               # (Nb_p, D)
    novel_t = jnp.pad(n_n.T, ((0, 0), (0, nn_p - nn)))            # (D, Nn_p)
    btrg_p = jnp.pad(btrg.reshape(nb, 1), ((0, nb_p - nb), (0, 0)),
                     constant_values=-1_000_000)                  # (Nb_p, 1)
    ntrg_p = jnp.pad(ntrg.reshape(1, nn), ((0, 0), (0, nn_p - nn)),
                     constant_values=-2_000_000)                  # (1, Nn_p)

    bytes_accessed = (base_p.size * 2 + novel_t.size * 2
                      + (btrg_p.size + ntrg_p.size) * 4
                      + nb_t * 8 * 128 * 4)

    partials = pl.pallas_call(
        _cosine_sim_kernel,
        out_shape=jax.ShapeDtypeStruct((nb_t * 8, 128), jnp.float32),
        grid=(nb_t, nn_t),
        in_specs=[
            pl.BlockSpec((TILE_NB, d), lambda i, j: (i, 0)),
            pl.BlockSpec((d, TILE_NN), lambda i, j: (0, j)),
            pl.BlockSpec((TILE_NB, 1), lambda i, j: (i, 0)),
            pl.BlockSpec((1, TILE_NN), lambda i, j: (0, j)),
        ],
        out_specs=pl.BlockSpec((8, 128), lambda i, j: (i, 0)),
        compiler_params=pltpu.CompilerParams(
            dimension_semantics=("parallel", "arbitrary"),
            vmem_limit_bytes=32 * 1024 * 1024),
        cost_estimate=pl.CostEstimate(
            flops=2 * nb_p * nn_p * d,
            transcendentals=0,
            bytes_accessed=bytes_accessed),
    )(base_p, novel_t, btrg_p, ntrg_p)

    total = jnp.sum(partials)
    count = (jnp.sum(base_valid.astype(jnp.float32))
             * jnp.sum(novel_valid.astype(jnp.float32)))
    # TODO(synk): PyTorch's .mean() over an empty selection returns NaN; we
    # guard against count == 0 and return 0 instead.
    loss_cos = total / jnp.maximum(count, 1.0)
    return jnp.minimum(LOSS_WEIGHT * loss_cos, MAX_CONTRASTIVE_LOSS)


def _numpy_reference(base, novel, gt_base, targets, classes_eq, num_classes):
    base, novel = np.asarray(base), np.asarray(novel)
    gt_base, targets = np.asarray(gt_base), np.asarray(targets)
    classes_eq = np.asarray(classes_eq)

    base_pos = (gt_base >= 0) & (gt_base < num_classes)
    pos = (targets >= 0) & (targets > num_classes)
    b = base[base_pos]
    v = novel[pos]
    btrg = gt_base[base_pos].astype(np.float32)
    ntrg = classes_eq[targets[pos]].astype(np.float32)

    dot = b @ v.T
    n1 = np.sqrt((b * b).sum(1))[:, None]
    n2 = np.sqrt((v * v).sum(1))[None, :]
    cos = dot / np.clip(n1 * n2, 1e-8, None)
    cm = (ntrg[None, :] == btrg[:, None]).astype(np.float32)
    im = 1.0 - cm
    loss = (cm - cos * cm + np.clip(cos * im - MARGIN * im, 0, None)).mean()
    return min(LOSS_WEIGHT * loss, MAX_CONTRASTIVE_LOSS)


if __name__ == "__main__":
    key = jax.random.PRNGKey(0)
    k1, k2, k3, k4 = jax.random.split(key, 4)

    num_classes = 5        # base classes are [0, 5); novel classes are > 5
    total_classes = 12
    nb, nn, d = 16, 24, 32

    base_feats = jax.random.normal(k1, (nb, d), dtype=jnp.float32)
    novel_feats = jax.random.normal(k2, (nn, d), dtype=jnp.float32)

    gt_base_bbox = jax.random.randint(k3, (nb,), -1, 9, dtype=jnp.int32)
    bbox_targets = jax.random.randint(k4, (nn,), 0, total_classes,
                                      dtype=jnp.int32)
    # guarantee at least one valid row on each side
    gt_base_bbox = gt_base_bbox.at[0].set(1)
    bbox_targets = bbox_targets.at[0].set(num_classes + 2)

    # deterministic novel->base class mapping (synthetic classes_eq)
    classes_eq = jnp.arange(total_classes, dtype=jnp.int32) % num_classes

    loss = cosine_sim_loss(base_feats, novel_feats, gt_base_bbox,
                           bbox_targets, classes_eq, num_classes)
    jax.block_until_ready(loss)

    ref = _numpy_reference(base_feats, novel_feats, gt_base_bbox,
                           bbox_targets, classes_eq, num_classes)
    # Tolerance loosened vs. the f32 version: the matmul now runs in bf16
    # (f32 accumulation), which perturbs each cosine by ~1e-2 at worst.
    assert abs(float(loss) - float(ref)) < 2e-2, (float(loss), float(ref))
    print("KERNEL_OK")
</pallas_src>

<mosaic_0001>
module attributes {stable_mosaic.version = 11 : i64} {
  func.func @_cosine_sim_kernel(%arg0: i32, %arg1: i32, %arg2: memref<128x32xbf16, #tpu.memory_space<vmem>>, %arg3: memref<32x256xbf16, #tpu.memory_space<vmem>>, %arg4: memref<128x1xi32, #tpu.memory_space<vmem>>, %arg5: memref<1x256xi32, #tpu.memory_space<vmem>>, %arg6: memref<8x128xf32, #tpu.memory_space<vmem>>) attributes {dimension_semantics = [#tpu.dimension_semantics<parallel>, #tpu.dimension_semantics<arbitrary>], iteration_bounds = array<i64: 1, 1>, scalar_prefetch = 0 : i64, scratch_operands = 0 : i64, tpu.core_type = #tpu.core_type<tc>, window_params = [{transform_indices = @transform_0, window_bounds = array<i64: 128, 32>}, {transform_indices = @transform_1, window_bounds = array<i64: 32, 256>}, {transform_indices = @transform_2, window_bounds = array<i64: 128, 1>}, {transform_indices = @transform_3, window_bounds = array<i64: 1, 256>}, {transform_indices = @transform_4, window_bounds = array<i64: 8, 128>}]} {
    %c0_i32 = arith.constant 0 : i32
    %0 = arith.cmpi eq, %arg1, %c0_i32 : i32
    %1 = arith.extui %0 : i1 to i32
    %c0_i32_0 = arith.constant 0 : i32
    %2 = arith.cmpi ne, %1, %c0_i32_0 : i32
    scf.if %2 {
      %cst_16 = arith.constant 0.000000e+00 : f32
      %86 = vector.broadcast %cst_16 : f32 to vector<8x128xf32>
      %c0_17 = arith.constant 0 : index
      %c0_18 = arith.constant 0 : index
      %87 = vector.load %arg6[%c0_17, %c0_18] : memref<8x128xf32, #tpu.memory_space<vmem>>, vector<8x128xf32>
      tpu.vector_store %arg6[%c0_17, %c0_18], %86 {strides = array<i32>} : memref<8x128xf32, #tpu.memory_space<vmem>>, vector<8x128xf32>,
    } else {
    }
    %c0 = arith.constant 0 : index
    %c0_1 = arith.constant 0 : index
    %3 = vector.load %arg2[%c0, %c0_1] : memref<128x32xbf16, #tpu.memory_space<vmem>>, vector<128x32xbf16>
    %c0_2 = arith.constant 0 : index
    %c0_3 = arith.constant 0 : index
    %4 = vector.load %arg3[%c0_2, %c0_3] : memref<32x256xbf16, #tpu.memory_space<vmem>>, vector<32x256xbf16>
    %cst = arith.constant dense<0.000000e+00> : vector<128x256xf32>
    %5 = tpu.matmul %3, %4, %cst {dimension_numbers = #tpu.dot_dimension_numbers<[1], [0], [0], [1], [0, 0, 1, 1], [], []>} : vector<128x32xbf16>, vector<32x256xbf16>, vector<128x256xf32> -> vector<128x256xf32>
    %c0_4 = arith.constant 0 : index
    %c0_5 = arith.constant 0 : index
    %6 = vector.load %arg4[%c0_4, %c0_5] : memref<128x1xi32, #tpu.memory_space<vmem>>, vector<128x1xi32>
    %c0_6 = arith.constant 0 : index
    %c0_7 = arith.constant 0 : index
    %7 = vector.load %arg5[%c0_6, %c0_7] : memref<1x256xi32, #tpu.memory_space<vmem>>, vector<1x256xi32>
    %8 = vector.broadcast %6 : vector<128x1xi32> to vector<128x256xi32>
    %9 = vector.broadcast %7 : vector<1x256xi32> to vector<128x256xi32>
    %10 = arith.cmpi eq, %8, %9 : vector<128x256xi32>
    %cst_8 = arith.constant 1.000000e+00 : f32
    %11 = vector.broadcast %cst_8 : f32 to vector<128x256xf32>
    %12 = arith.subf %11, %5 : vector<128x256xf32>
    %cst_9 = arith.constant 5.000000e-01 : f32
    %13 = vector.broadcast %cst_9 : f32 to vector<128x256xf32>
    %14 = arith.subf %5, %13 : vector<128x256xf32>
    %cst_10 = arith.constant 0.000000e+00 : f32
    %15 = vector.broadcast %cst_10 : f32 to vector<128x256xf32>
    %16 = arith.maximumf %14, %15 : vector<128x256xf32>
    %17 = arith.select %10, %12, %16 : vector<128x256xi1>, vector<128x256xf32>
    %cst_11 = arith.constant 0.000000e+00 : f32
    %18 = vector.broadcast %cst_11 : f32 to vector<8x128xf32>
    %19 = vector.extract_strided_slice %17 {offsets = [0, 0], sizes = [8, 128], strides = [1, 1]} : vector<128x256xf32> to vector<8x128xf32>
    %20 = arith.addf %18, %19 : vector<8x128xf32>
    %21 = vector.extract_strided_slice %17 {offsets = [0, 128], sizes = [8, 128], strides = [1, 1]} : vector<128x256xf32> to vector<8x128xf32>
    %22 = arith.addf %20, %21 : vector<8x128xf32>
    %23 = vector.extract_strided_slice %17 {offsets = [8, 0], sizes = [8, 128], strides = [1, 1]} : vector<128x256xf32> to vector<8x128xf32>
    %24 = arith.addf %22, %23 : vector<8x128xf32>
    %25 = vector.extract_strided_slice %17 {offsets = [8, 128], sizes = [8, 128], strides = [1, 1]} : vector<128x256xf32> to vector<8x128xf32>
    %26 = arith.addf %24, %25 : vector<8x128xf32>
    %27 = vector.extract_strided_slice %17 {offsets = [16, 0], sizes = [8, 128], strides = [1, 1]} : vector<128x256xf32> to vector<8x128xf32>
    %28 = arith.addf %26, %27 : vector<8x128xf32>
    %29 = vector.extract_strided_slice %17 {offsets = [16, 128], sizes = [8, 128], strides = [1, 1]} : vector<128x256xf32> to vector<8x128xf32>
    %30 = arith.addf %28, %29 : vector<8x128xf32>
    %31 = vector.extract_strided_slice %17 {offsets = [24, 0], sizes = [8, 128], strides = [1, 1]} : vector<128x256xf32> to vector<8x128xf32>
    %32 = arith.addf %30, %31 : vector<8x128xf32>
    %33 = vector.extract_strided_slice %17 {offsets = [24, 128], sizes = [8, 128], strides = [1, 1]} : vector<128x256xf32> to vector<8x128xf32>
    %34 = arith.addf %32, %33 : vector<8x128xf32>
    %35 = vector.extract_strided_slice %17 {offsets = [32, 0], sizes = [8, 128], strides = [1, 1]} : vector<128x256xf32> to vector<8x128xf32>
    %36 = arith.addf %34, %35 : vector<8x128xf32>
    %37 = vector.extract_strided_slice %17 {offsets = [32, 128], sizes = [8, 128], strides = [1, 1]} : vector<128x256xf32> to vector<8x128xf32>
    %38 = arith.addf %36, %37 : vector<8x128xf32>
    %39 = vector.extract_strided_slice %17 {offsets = [40, 0], sizes = [8, 128], strides = [1, 1]} : vector<128x256xf32> to vector<8x128xf32>
    %40 = arith.addf %38, %39 : vector<8x128xf32>
    %41 = vector.extract_strided_slice %17 {offsets = [40, 128], sizes = [8, 128], strides = [1, 1]} : vector<128x256xf32> to vector<8x128xf32>
    %42 = arith.addf %40, %41 : vector<8x128xf32>
    %43 = vector.extract_strided_slice %17 {offsets = [48, 0], sizes = [8, 128], strides = [1, 1]} : vector<128x256xf32> to vector<8x128xf32>
    %44 = arith.addf %42, %43 : vector<8x128xf32>
    %45 = vector.extract_strided_slice %17 {offsets = [48, 128], sizes = [8, 128], strides = [1, 1]} : vector<128x256xf32> to vector<8x128xf32>
    %46 = arith.addf %44, %45 : vector<8x128xf32>
    %47 = vector.extract_strided_slice %17 {offsets = [56, 0], sizes = [8, 128], strides = [1, 1]} : vector<128x256xf32> to vector<8x128xf32>
    %48 = arith.addf %46, %47 : vector<8x128xf32>
    %49 = vector.extract_strided_slice %17 {offsets = [56, 128], sizes = [8, 128], strides = [1, 1]} : vector<128x256xf32> to vector<8x128xf32>
    %50 = arith.addf %48, %49 : vector<8x128xf32>
    %51 = vector.extract_strided_slice %17 {offsets = [64, 0], sizes = [8, 128], strides = [1, 1]} : vector<128x256xf32> to vector<8x128xf32>
    %52 = arith.addf %50, %51 : vector<8x128xf32>
    %53 = vector.extract_strided_slice %17 {offsets = [64, 128], sizes = [8, 128], strides = [1, 1]} : vector<128x256xf32> to vector<8x128xf32>
    %54 = arith.addf %52, %53 : vector<8x128xf32>
    %55 = vector.extract_strided_slice %17 {offsets = [72, 0], sizes = [8, 128], strides = [1, 1]} : vector<128x256xf32> to vector<8x128xf32>
    %56 = arith.addf %54, %55 : vector<8x128xf32>
    %57 = vector.extract_strided_slice %17 {offsets = [72, 128], sizes = [8, 128], strides = [1, 1]} : vector<128x256xf32> to vector<8x128xf32>
    %58 = arith.addf %56, %57 : vector<8x128xf32>
    %59 = vector.extract_strided_slice %17 {offsets = [80, 0], sizes = [8, 128], strides = [1, 1]} : vector<128x256xf32> to vector<8x128xf32>
    %60 = arith.addf %58, %59 : vector<8x128xf32>
    %61 = vector.extract_strided_slice %17 {offsets = [80, 128], sizes = [8, 128], strides = [1, 1]} : vector<128x256xf32> to vector<8x128xf32>
    %62 = arith.addf %60, %61 : vector<8x128xf32>
    %63 = vector.extract_strided_slice %17 {offsets = [88, 0], sizes = [8, 128], strides = [1, 1]} : vector<128x256xf32> to vector<8x128xf32>
    %64 = arith.addf %62, %63 : vector<8x128xf32>
    %65 = vector.extract_strided_slice %17 {offsets = [88, 128], sizes = [8, 128], strides = [1, 1]} : vector<128x256xf32> to vector<8x128xf32>
    %66 = arith.addf %64, %65 : vector<8x128xf32>
    %67 = vector.extract_strided_slice %17 {offsets = [96, 0], sizes = [8, 128], strides = [1, 1]} : vector<128x256xf32> to vector<8x128xf32>
    %68 = arith.addf %66, %67 : vector<8x128xf32>
    %69 = vector.extract_strided_slice %17 {offsets = [96, 128], sizes = [8, 128], strides = [1, 1]} : vector<128x256xf32> to vector<8x128xf32>
    %70 = arith.addf %68, %69 : vector<8x128xf32>
    %71 = vector.extract_strided_slice %17 {offsets = [104, 0], sizes = [8, 128], strides = [1, 1]} : vector<128x256xf32> to vector<8x128xf32>
    %72 = arith.addf %70, %71 : vector<8x128xf32>
    %73 = vector.extract_strided_slice %17 {offsets = [104, 128], sizes = [8, 128], strides = [1, 1]} : vector<128x256xf32> to vector<8x128xf32>
    %74 = arith.addf %72, %73 : vector<8x128xf32>
    %75 = vector.extract_strided_slice %17 {offsets = [112, 0], sizes = [8, 128], strides = [1, 1]} : vector<128x256xf32> to vector<8x128xf32>
    %76 = arith.addf %74, %75 : vector<8x128xf32>
    %77 = vector.extract_strided_slice %17 {offsets = [112, 128], sizes = [8, 128], strides = [1, 1]} : vector<128x256xf32> to vector<8x128xf32>
    %78 = arith.addf %76, %77 : vector<8x128xf32>
    %79 = vector.extract_strided_slice %17 {offsets = [120, 0], sizes = [8, 128], strides = [1, 1]} : vector<128x256xf32> to vector<8x128xf32>
    %80 = arith.addf %78, %79 : vector<8x128xf32>
    %81 = vector.extract_strided_slice %17 {offsets = [120, 128], sizes = [8, 128], strides = [1, 1]} : vector<128x256xf32> to vector<8x128xf32>
    %82 = arith.addf %80, %81 : vector<8x128xf32>
    %c0_12 = arith.constant 0 : index
    %c0_13 = arith.constant 0 : index
    %83 = vector.load %arg6[%c0_12, %c0_13] : memref<8x128xf32, #tpu.memory_space<vmem>>, vector<8x128xf32>
    %84 = arith.addf %83, %82 : vector<8x128xf32>
    %c0_14 = arith.constant 0 : index
    %c0_15 = arith.constant 0 : index
    %85 = vector.load %arg6[%c0_14, %c0_15] : memref<8x128xf32, #tpu.memory_space<vmem>>, vector<8x128xf32>
    tpu.vector_store %arg6[%c0_14, %c0_15], %84 {strides = array<i32>} : memref<8x128xf32, #tpu.memory_space<vmem>>, vector<8x128xf32>,
    return
  }
  func.func @transform_0(%arg0: i32, %arg1: i32) -> (i32, i32) {
    %c0_i32 = arith.constant 0 : i32
    %c0_i32_0 = arith.constant 0 : i32
    return %arg0, %c0_i32 : i32, i32
  }
  func.func @transform_1(%arg0: i32, %arg1: i32) -> (i32, i32) {
    %c0_i32 = arith.constant 0 : i32
    %c0_i32_0 = arith.constant 0 : i32
    return %c0_i32, %arg1 : i32, i32
  }
  func.func @transform_2(%arg0: i32, %arg1: i32) -> (i32, i32) {
    %c0_i32 = arith.constant 0 : i32
    %c0_i32_0 = arith.constant 0 : i32
    return %arg0, %c0_i32 : i32, i32
  }
  func.func @transform_3(%arg0: i32, %arg1: i32) -> (i32, i32) {
    %c0_i32 = arith.constant 0 : i32
    %c0_i32_0 = arith.constant 0 : i32
    return %c0_i32, %arg1 : i32, i32
  }
  func.func @transform_4(%arg0: i32, %arg1: i32) -> (i32, i32) {
    %c0_i32 = arith.constant 0 : i32
    %c0_i32_0 = arith.constant 0 : i32
    return %arg0, %c0_i32 : i32, i32
  }
}

</mosaic_0001>

<bundles_post_ra>
// kernel: cosine_sim_loss.1
= control target key start
LH: loop header
LB: loop body
LE: loop exit
PB: predicated region body
PF: predicated region fallthrough
CT: control target
= control target key end

     0   :  { %v587_v1 = vmov 0   ;;  %vm103_vm0 = vcmask 261120   ;;  %v306_v29 = vlaneseq  ;;  %s811_s1 = inlined_call_operand.vmem [shape: bf16[32,256], index: 1, kind: input, shape index: {}]   ;;  %s812_s0 = inlined_call_operand.vmem [shape: bf16[128,32], index: 0, kind: input, shape index: {}]   ;;  %s813_s2 = inlined_call_operand.vmem [shape: s32[128,1], index: 2, kind: input, shape index: {}]   ;;  %s814_s3 = inlined_call_operand.vmem [shape: s32[1,256], index: 3, kind: input, shape index: {}]   ;;  %s815_s4 = inlined_call_operand.vmem [shape: f32[8,128], index: 4, kind: output, shape index: {}]  }
   0x1   :  { %v573_v0 = vld [vmem:[%s811_s1 + $0x4] ss:$8 sps:$4 sm:$0xff]   ;;  %160 = vmatprep.mubr.bf16.mxu0 %v587_v1  ;;  %200 = vmatprep.mubr.bf16.mxu1 %v587_v1  ;;  %v575_v2 = vld [vmem:[%s811_s1] ss:$8 sps:$4 sm:$0xff]   ;;  %v576_v3 = vld [vmem:[%s811_s1 + $0x14] ss:$8 sps:$4 sm:$0xff]  }
   0x2   :  { %571 = vset.pattern.permute.xlu0 %v587_v1  ;;  %572 = vset.pattern.permute.xlu1 %v587_v1  ;;  %v578_v4 = vld [vmem:[%s811_s1 + $0x10] ss:$8 sps:$4 sm:$0xff]   ;;  %v579_v5 = vld [vmem:[%s812_s0] sm:$0xff]   ;;  %v242_v9 = vld [vmem:[%s813_s2 + $0x8] sm:$0xff]  ;;  %v307_v30 = vshrl.u32 %v306_v29, 7 }
   0x3   :  { %128 = vmatprep.subr.bf16.mxu0 %v573_v0  ;;  %565 = vmatprep.subr.bf16.mxu1 %v573_v0  ;;  %v580_v6 = vld [vmem:[%s812_s0 + $0x20] sm:$0xff]   ;;  %v243_v8 = vld [vmem:[%s813_s2 + $0x10] sm:$0xff]  ;;  %v244_v10 = vld [vmem:[%s813_s2 + $0x18] sm:$0xff] }
   0x4   :  { %129 = vmatpush1.bf16.msra.mxu0 %v575_v2  ;;  %567 = vmatpush1.bf16.msra.mxu1 %v575_v2  ;;  %v241_v7 = vld [vmem:[%s813_s2] sm:$0xff]  ;;  %v581_v11 = vld [vmem:[%s812_s0 + $0x8] sm:$0xff]   ;;  %v247_v15 = vld [vmem:[%s813_s2 + $0x30] sm:$0xff]  ;;  %v308_v31 = vsub.s32 0, %v307_v30  ;;  %v312_v33 = vsub.s32 1, %v307_v30 }
   0x5   :  { %130 = vmatprep.subr.bf16.mxu0 %v576_v3  ;;  %566 = vmatprep.subr.bf16.mxu1 %v576_v3  ;;  %v582_v12 = vld [vmem:[%s812_s0 + $0x28] sm:$0xff]   ;;  %v245_v13 = vld [vmem:[%s813_s2 + $0x20] sm:$0xff]  ;;  %v248_v16 = vld [vmem:[%s813_s2 + $0x38] sm:$0xff] }
   0x6   :  { %259 = vperm.xlu0 %571, %v241_v7   ;;  %265 = vperm.xlu1 %572, %v243_v8   ;;  %v246_v14 = vld [vmem:[%s813_s2 + $0x28] sm:$0xff]  ;;  %v583_v17 = vld [vmem:[%s812_s0 + $0x10] sm:$0xff]   ;;  %v249_v19 = vld [vmem:[%s813_s2 + $0x40] sm:$0xff] }
   0x7   :  { %v584_v18 = vld [vmem:[%s812_s0 + $0x30] sm:$0xff]   ;;  %v250_v20 = vld [vmem:[%s813_s2 + $0x48] sm:$0xff]  ;;  %v252_v22 = vld [vmem:[%s813_s2 + $0x58] sm:$0xff] }
   0x8   :  { %131 = vmatpush1.bf16.msra.mxu0 %v578_v4  ;;  %568 = vmatpush1.bf16.msra.mxu1 %v578_v4  ;;  %v251_v21 = vld [vmem:[%s813_s2 + $0x50] sm:$0xff]  ;;  %v585_v23 = vld [vmem:[%s812_s0 + $0x18] sm:$0xff]   ;;  %v253_v25 = vld [vmem:[%s813_s2 + $0x60] sm:$0xff] }
   0x9   :  { %v586_v24 = vld [vmem:[%s812_s0 + $0x38] sm:$0xff]   ;;  %v254_v26 = vld [vmem:[%s813_s2 + $0x68] sm:$0xff]  ;;  %v255_v27 = vld [vmem:[%s813_s2 + $0x70] sm:$0xff] }
   0xa   :  { %262 = vperm.xlu0 %571, %v242_v9   ;;  %268 = vperm.xlu1 %572, %v244_v10   ;;  %v256_v28 = vld [vmem:[%s813_s2 + $0x78] sm:$0xff]  ;;  %v257_v32 = vld [vmem:[%s814_s3] sm:$0x3] }
   0xb   :  { %525 = vmatmul.mubr.msk.bf16.vlgmr.msra.gmra.mrb[0].mxu0 %vm103_vm0, %v579_v5  ;;  %529 = vmatmul.mubr.msk.bf16.vlgmr.msra.gmra.mrb[0].mxu1 %vm103_vm0, %v580_v6  ;;  %v708_v34 = vrot.slane %v257_v32, %v308_v31  ;;  %v710_v35 = vrot.slane %v257_v32, %v312_v33 }
   0xc   :  { %170 = vmatprep.mubr.bf16.mxu0 %v587_v1  ;;  %210 = vmatprep.mubr.bf16.mxu1 %v587_v1 }
   0xe   :  { %271 = vperm.xlu0 %571, %v245_v13   ;;  %274 = vperm.xlu1 %572, %v246_v14  }
  0x12   :  { %277 = vperm.xlu0 %571, %v247_v15   ;;  %280 = vperm.xlu1 %572, %v248_v16  }
  0x13   :  { %526 = vmatmul.mubr.msk.bf16.gmra.mrb[4].mxu0 %vm103_vm0, %v581_v11  ;;  %530 = vmatmul.mubr.msk.bf16.gmra.mrb[4].mxu1 %vm103_vm0, %v582_v12 }
  0x14   :  { %180 = vmatprep.mubr.bf16.mxu0 %v587_v1  ;;  %220 = vmatprep.mubr.bf16.mxu1 %v587_v1 }
  0x16   :  { %283 = vperm.xlu0 %571, %v249_v19   ;;  %286 = vperm.xlu1 %572, %v250_v20  }
  0x1a   :  { %289 = vperm.xlu0 %571, %v251_v21   ;;  %292 = vperm.xlu1 %572, %v252_v22  }
  0x1b   :  { %527 = vmatmul.mubr.msk.bf16.gmra.mrb[8].mxu0 %vm103_vm0, %v583_v17  ;;  %531 = vmatmul.mubr.msk.bf16.gmra.mrb[8].mxu1 %vm103_vm0, %v584_v18 }
  0x1c   :  { %190 = vmatprep.mubr.bf16.mxu0 %v587_v1  ;;  %230 = vmatprep.mubr.bf16.mxu1 %v587_v1 }
  0x1e   :  { %295 = vperm.xlu0 %571, %v253_v25   ;;  %298 = vperm.xlu1 %572, %v254_v26  }
  0x22   :  { %301 = vperm.xlu0 %571, %v255_v27   ;;  %304 = vperm.xlu1 %572, %v256_v28  }
  0x23   :  { %528 = vmatmul.mubr.msk.bf16.gmra.mrb[12].mxu0 %vm103_vm0, %v585_v23  ;;  %532 = vmatmul.mubr.msk.bf16.gmra.mrb[12].mxu1 %vm103_vm0, %v586_v24 }
  0x85   :  { %v260_v36 = vpop.permute.xlu0 %259  ;;  %v266_v59 = vpop.permute.xlu1 %265 }
  0x86   :  { %vm314_vm1 = vcmp.eq.s32.totalorder %v260_v36, %v708_v34  ;;  %vm315_vm2 = vcmp.eq.s32.totalorder %v260_v36, %v710_v35  ;;  %vm318_vm5 = vcmp.eq.s32.totalorder %v266_v59, %v708_v34  ;;  %vm319_vm6 = vcmp.eq.s32.totalorder %v266_v59, %v710_v35 }
  0x89   :  { %v263_v53 = vpop.permute.xlu0 %262  ;;  %v269_v19 = vpop.permute.xlu1 %268 }
  0x8a   :  { %vm316_vm3 = vcmp.eq.s32.totalorder %v263_v53, %v708_v34  ;;  %vm317_vm4 = vcmp.eq.s32.totalorder %v263_v53, %v710_v35  ;;  %vm320_vm7 = vcmp.eq.s32.totalorder %v269_v19, %v708_v34  ;;  %vm321_vm8 = vcmp.eq.s32.totalorder %v269_v19, %v710_v35 }
  0xde   :  { %v162_v37 = vpop.f32.mrb[0].mxu0  ;;  %v712_v38 = vpop.f32.mrb[0].mxu1 }
  0xdf   :  { %v533_v39 = vadd.f32 -0.5, %v162_v37  ;;  %v164_v40 = vpop.f32.mrb[1].mxu0  ;;  %v714_v41 = vpop.f32.mrb[1].mxu1  ;;  %v346_v45 = vsub.f32 1.0, %v162_v37 }
  0xe0   :  { %v534_v42 = vadd.f32 -0.5, %v164_v40  ;;  %v166_v43 = vpop.f32.mrb[2].mxu0  ;;  %v717_v44 = vpop.f32.mrb[2].mxu1  ;;  %v347_v50 = vsub.f32 1.0, %v164_v40 }
  0xe1   :  { %v410_v46 = vmax.f32 %v533_v39, 0.0  ;;  %v535_v47 = vadd.f32 -0.5, %v166_v43  ;;  %v168_v48 = vpop.f32.mrb[3].mxu0  ;;  %v720_v49 = vpop.f32.mrb[3].mxu1  ;;  %v348_v55 = vsub.f32 1.0, %v166_v43 }
  0xe2   :  { %v411_v51 = vmax.f32 %v534_v42, 0.0  ;;  %v536_v52 = vadd.f32 -0.5, %v168_v48  ;;  %v349_v62 = vsub.f32 1.0, %v168_v48  ;;  %v272_v43 = vpop.permute.xlu0 %271 }
  0xe3   :  { %v442_v54 = vsel %vm314_vm1, %v346_v45, %v410_v46  ;;  %v412_v56 = vmax.f32 %v535_v47, 0.0  ;;  %vm322_vm9 = vcmp.eq.s32.totalorder %v272_v43, %v708_v34  ;;  %vm323_vm10 = vcmp.eq.s32.totalorder %v272_v43, %v710_v35 }
  0xe4   :  { %v443_v57 = vsel %vm315_vm2, %v347_v50, %v411_v51  ;;  %v413_v58 = vmax.f32 %v536_v52, 0.0 }
  0xe5   :  { %v475_v60 = vadd.f32 %v443_v57, %v442_v54  ;;  %v444_v61 = vsel %vm316_vm3, %v348_v55, %v412_v56  ;;  %v275_v54 = vpop.permute.xlu1 %274 }
  0xe6   :  { %v172_v63 = vpop.f32.mrb[4].mxu0  ;;  %v723_v0 = vpop.f32.mrb[4].mxu1  ;;  %v445_v5 = vsel %vm317_vm4, %v349_v62, %v413_v58  ;;  %vm324_vm11 = vcmp.eq.s32.totalorder %v275_v54, %v708_v34  ;;  %vm325_vm12 = vcmp.eq.s32.totalorder %v275_v54, %v710_v35 }
  0xe7   :  { %v476_v1 = vadd.f32 %v475_v60, %v444_v61  ;;  %v537_v2 = vadd.f32 -0.5, %v172_v63  ;;  %v174_v3 = vpop.f32.mrb[5].mxu0  ;;  %v726_v4 = vpop.f32.mrb[5].mxu1  ;;  %v350_v9 = vsub.f32 1.0, %v172_v63 }
  0xe8   :  { %v176_v6 = vpop.f32.mrb[6].mxu0  ;;  %v729_v7 = vpop.f32.mrb[6].mxu1  ;;  %v538_v11 = vadd.f32 -0.5, %v174_v3  ;;  %v351_v15 = vsub.f32 1.0, %v174_v3 }
  0xe9   :  { %v477_v8 = vadd.f32 %v476_v1, %v445_v5  ;;  %v414_v10 = vmax.f32 %v537_v2, 0.0  ;;  %v178_v12 = vpop.f32.mrb[7].mxu0  ;;  %v731_v13 = vpop.f32.mrb[7].mxu1  ;;  %v539_v17 = vadd.f32 -0.5, %v176_v6  ;;  %v352_v21 = vsub.f32 1.0, %v176_v6 }
  0xea   :  { %v415_v16 = vmax.f32 %v538_v11, 0.0  ;;  %v540_v23 = vadd.f32 -0.5, %v178_v12  ;;  %v353_v28 = vsub.f32 1.0, %v178_v12 }
  0xeb   :  { %v446_v14 = vsel %vm318_vm5, %v350_v9, %v414_v10  ;;  %v416_v22 = vmax.f32 %v539_v17, 0.0 }
  0xec   :  { %v478_v18 = vadd.f32 %v477_v8, %v446_v14  ;;  %v447_v20 = vsel %vm319_vm6, %v351_v15, %v415_v16  ;;  %v417_v29 = vmax.f32 %v540_v23, 0.0  ;;  %v278_v15 = vpop.permute.xlu0 %277 }
  0xed   :  { %v448_v27 = vsel %vm320_vm7, %v352_v21, %v416_v22  ;;  %vm326_vm13 = vcmp.eq.s32.totalorder %v278_v15, %v708_v34  ;;  %vm327_vm14 = vcmp.eq.s32.totalorder %v278_v15, %v710_v35  ;;  %v367_v15 = vsub.f32 1.0, %v726_v4 }
  0xee   :  { %v479_v24 = vadd.f32 %v478_v18, %v447_v20  ;;  %v182_v25 = vpop.f32.mrb[8].mxu0  ;;  %v735_v26 = vpop.f32.mrb[8].mxu1  ;;  %v449_v39 = vsel %vm321_vm8, %v353_v28, %v417_v29  ;;  %v549_v20 = vadd.f32 -0.5, %v712_v38 }
  0xef   :  { %v184_v30 = vpop.f32.mrb[9].mxu0  ;;  %v737_v31 = vpop.f32.mrb[9].mxu1  ;;  %v541_v33 = vadd.f32 -0.5, %v182_v25  ;;  %v354_v46 = vsub.f32 1.0, %v182_v25  ;;  %v550_v25 = vadd.f32 -0.5, %v714_v41 }
  0xf0   :  { %v480_v32 = vadd.f32 %v479_v24, %v448_v27  ;;  %v186_v36 = vpop.f32.mrb[10].mxu0  ;;  %v740_v37 = vpop.f32.mrb[10].mxu1  ;;  %v542_v48 = vadd.f32 -0.5, %v184_v30  ;;  %v355_v51 = vsub.f32 1.0, %v184_v30 }
  0xf1   :  { %v188_v40 = vpop.f32.mrb[11].mxu0  ;;  %v742_v42 = vpop.f32.mrb[11].mxu1  ;;  %v418_v47 = vmax.f32 %v541_v33, 0.0  ;;  %v543_v53 = vadd.f32 -0.5, %v186_v36  ;;  %v356_v57 = vsub.f32 1.0, %v186_v36  ;;  %v362_v36 = vsub.f32 1.0, %v712_v38 }
  0xf2   :  { %v481_v45 = vadd.f32 %v480_v32, %v449_v39  ;;  %v419_v52 = vmax.f32 %v542_v48, 0.0  ;;  %v544_v59 = vadd.f32 -0.5, %v188_v40  ;;  %v357_v3 = vsub.f32 1.0, %v188_v40  ;;  %v281_v28 = vpop.permute.xlu1 %280  ;;  %v284_v43 = vpop.permute.xlu0 %283 }
  0xf3   :  { %v450_v50 = vsel %vm322_vm9, %v354_v46, %v418_v47  ;;  %v420_v58 = vmax.f32 %v543_v53, 0.0  ;;  %vm328_vm15 = vcmp.eq.s32.totalorder %v281_v28, %v708_v34  ;;  %v426_v39 = vmax.f32 %v549_v20, 0.0 }
  0xf4   :  { %v482_v55 = vadd.f32 %v481_v45, %v450_v50  ;;  %v451_v56 = vsel %vm323_vm10, %v355_v51, %v419_v52  ;;  %v421_v5 = vmax.f32 %v544_v59, 0.0  ;;  %v551_v45 = vadd.f32 -0.5, %v717_v44 }
  0xf5   :  { %v452_v2 = vsel %vm324_vm11, %v356_v57, %v420_v58  ;;  %vm330_vm0 = vcmp.eq.s32.totalorder %v284_v43, %v708_v34  ;;  %vm329_vm1 = vcmp.eq.s32.totalorder %v281_v28, %v710_v35  ;;  %v363_v51 = vsub.f32 1.0, %v714_v41 }
  0xf6   :  { %v192_v60 = vpop.f32.mrb[12].mxu0  ;;  %v746_v61 = vpop.f32.mrb[12].mxu1  ;;  %v483_v62 = vadd.f32 %v482_v55, %v451_v56  ;;  %v453_v14 = vsel %vm325_vm12, %v357_v3, %v421_v5  ;;  %v427_v52 = vmax.f32 %v550_v25, 0.0  ;;  %v552_v53 = vadd.f32 -0.5, %v720_v49 }
  0xf7   :  { %v194_v63 = vpop.f32.mrb[13].mxu0  ;;  %v749_v1 = vpop.f32.mrb[13].mxu1  ;;  %v545_v10 = vadd.f32 -0.5, %v192_v60  ;;  %v358_v17 = vsub.f32 1.0, %v192_v60  ;;  %vm331_vm2 = vcmp.eq.s32.totalorder %v284_v43, %v710_v35  ;;  %v458_v56 = vsel %vm330_vm0, %v362_v36, %v426_v39 }
  0xf8   :  { %v196_v6 = vpop.f32.mrb[14].mxu0  ;;  %v751_v8 = vpop.f32.mrb[14].mxu1  ;;  %v484_v9 = vadd.f32 %v483_v62, %v452_v2  ;;  %v546_v19 = vadd.f32 -0.5, %v194_v63  ;;  %v359_v22 = vsub.f32 1.0, %v194_v63  ;;  %v364_v57 = vsub.f32 1.0, %v717_v44 }
  0xf9   :  { %v198_v11 = vpop.f32.mrb[15].mxu0  ;;  %v754_v12 = vpop.f32.mrb[15].mxu1  ;;  %v422_v18 = vmax.f32 %v545_v10, 0.0  ;;  %v547_v24 = vadd.f32 -0.5, %v196_v6  ;;  %v360_v30 = vsub.f32 1.0, %v196_v6  ;;  %v428_v58 = vmax.f32 %v551_v45, 0.0 }
  0xfa   :  { %v485_v16 = vadd.f32 %v484_v9, %v453_v14  ;;  %v423_v23 = vmax.f32 %v546_v19, 0.0  ;;  %v548_v33 = vadd.f32 -0.5, %v198_v11  ;;  %v361_v47 = vsub.f32 1.0, %v198_v11  ;;  %v287_v55 = vpop.permute.xlu1 %286  ;;  %v290_v11 = vpop.permute.xlu0 %289 }
  0xfb   :  { %v454_v21 = vsel %vm326_vm13, %v358_v17, %v422_v18  ;;  %v424_v32 = vmax.f32 %v547_v24, 0.0  ;;  %v553_v59 = vadd.f32 -0.5, %v723_v0  ;;  %vm332_vm3 = vcmp.eq.s32.totalorder %v287_v55, %v708_v34 }
  0xfc   :  { %v486_v27 = vadd.f32 %v485_v16, %v454_v21  ;;  %v455_v29 = vsel %vm327_vm14, %v359_v22, %v423_v23  ;;  %v425_v48 = vmax.f32 %v548_v33, 0.0  ;;  %v459_v62 = vsel %vm331_vm2, %v363_v51, %v427_v52 }
  0xfd   :  { %v456_v46 = vsel %vm328_vm15, %v360_v30, %v424_v32  ;;  %v365_v41 = vsub.f32 1.0, %v720_v49  ;;  %v429_v63 = vmax.f32 %v552_v53, 0.0  ;;  %v554_v2 = vadd.f32 -0.5, %v726_v4 }
  0xfe   :  { %v487_v40 = vadd.f32 %v486_v27, %v455_v29  ;;  %v457_v54 = vsel %vm329_vm1, %v361_v47, %v425_v48  ;;  %vm333_vm4 = vcmp.eq.s32.totalorder %v287_v55, %v710_v35  ;;  %v460_v5 = vsel %vm332_vm3, %v364_v57, %v428_v58  ;;  %v293_v22 = vpop.permute.xlu1 %292  ;;  %v296_v33 = vpop.permute.xlu0 %295 }
  0xff   :  { %v366_v6 = vsub.f32 1.0, %v723_v0  ;;  %v430_v9 = vmax.f32 %v553_v59, 0.0  ;;  %v555_v44 = vadd.f32 -0.5, %v729_v7  ;;  %v461_v14 = vsel %vm333_vm4, %v365_v41, %v429_v63 }
 0x100   :  { %v488_v50 = vadd.f32 %v487_v40, %v456_v46  ;;  %v431_v16 = vmax.f32 %v554_v2, 0.0  ;;  %v556_v49 = vadd.f32 -0.5, %v731_v13  ;;  %vm334_vm5 = vcmp.eq.s32.totalorder %v290_v11, %v708_v34 }
 0x101   :  { %v462_v18 = vsel %vm334_vm5, %v366_v6, %v430_v9  ;;  %v368_v19 = vsub.f32 1.0, %v729_v7  ;;  %v432_v20 = vmax.f32 %v555_v44, 0.0  ;;  %v557_v0 = vadd.f32 -0.5, %v735_v26 }
 0x102   :  { %v489_v38 = vadd.f32 %v488_v50, %v457_v54  ;;  %vm335_vm6 = vcmp.eq.s32.totalorder %v290_v11, %v710_v35  ;;  %v369_v24 = vsub.f32 1.0, %v731_v13  ;;  %v433_v4 = vmax.f32 %v556_v49, 0.0  ;;  %v299_v50 = vpop.permute.xlu1 %298 }
 0x103   :  { %v463_v23 = vsel %vm335_vm6, %v367_v15, %v431_v16  ;;  %v558_v25 = vadd.f32 -0.5, %v737_v31  ;;  %vm336_vm7 = vcmp.eq.s32.totalorder %v293_v22, %v708_v34  ;;  %v370_v29 = vsub.f32 1.0, %v735_v26 }
 0x104   :  { %v490_v60 = vadd.f32 %v489_v38, %v458_v56  ;;  %v464_v28 = vsel %vm336_vm7, %v368_v19, %v432_v20  ;;  %v434_v7 = vmax.f32 %v557_v0, 0.0  ;;  %v559_v30 = vadd.f32 -0.5, %v740_v37  ;;  %v302_v38 = vpop.permute.xlu0 %301 }
 0x105   :  { %vm337_vm8 = vcmp.eq.s32.totalorder %v293_v22, %v710_v35  ;;  %v371_v39 = vsub.f32 1.0, %v737_v31  ;;  %v435_v13 = vmax.f32 %v558_v25, 0.0  ;;  %v560_v40 = vadd.f32 -0.5, %v742_v42 }
 0x106   :  { %v491_v3 = vadd.f32 %v490_v60, %v459_v62  ;;  %v465_v36 = vsel %vm337_vm8, %v369_v24, %v433_v4  ;;  %vm338_vm9 = vcmp.eq.s32.totalorder %v296_v33, %v708_v34  ;;  %v372_v46 = vsub.f32 1.0, %v740_v37  ;;  %v305_v63 = vpop.permute.xlu1 %304 }
 0x107   :  { %v466_v45 = vsel %vm338_vm9, %v370_v29, %v434_v7  ;;  %v436_v26 = vmax.f32 %v559_v30, 0.0  ;;  %v561_v47 = vadd.f32 -0.5, %v746_v61  ;;  %vm339_vm10 = vcmp.eq.s32.totalorder %v296_v33, %v710_v35 }
 0x108   :  { %v492_v10 = vadd.f32 %v491_v3, %v460_v5  ;;  %v467_v51 = vsel %vm339_vm10, %v371_v39, %v435_v13  ;;  %v373_v52 = vsub.f32 1.0, %v742_v42  ;;  %v437_v31 = vmax.f32 %v560_v40, 0.0 }
 0x109   :  { %v562_v53 = vadd.f32 -0.5, %v749_v1  ;;  %vm340_vm11 = vcmp.eq.s32.totalorder %v299_v50, %v708_v34  ;;  %v374_v37 = vsub.f32 1.0, %v746_v61  ;;  %v438_v56 = vmax.f32 %v561_v47, 0.0 }
 0x10a   :  { %v493_v17 = vadd.f32 %v492_v10, %v461_v14  ;;  %v468_v55 = vsel %vm340_vm11, %v372_v46, %v436_v26  ;;  %v563_v57 = vadd.f32 -0.5, %v751_v8  ;;  %vm341_vm12 = vcmp.eq.s32.totalorder %v299_v50, %v710_v35 }
 0x10b   :  { %v469_v59 = vsel %vm341_vm12, %v373_v52, %v437_v31  ;;  %v375_v60 = vsub.f32 1.0, %v749_v1  ;;  %v439_v42 = vmax.f32 %v562_v53, 0.0  ;;  %v564_v62 = vadd.f32 -0.5, %v754_v12 }
 0x10c   :  { %v494_v21 = vadd.f32 %v493_v17, %v462_v18  ;;  %vm342_vm13 = vcmp.eq.s32.totalorder %v302_v38, %v708_v34  ;;  %v376_v3 = vsub.f32 1.0, %v751_v8  ;;  %v440_v61 = vmax.f32 %v563_v57, 0.0 }
 0x10d   :  { %v470_v2 = vsel %vm342_vm13, %v374_v37, %v438_v56  ;;  %vm343_vm14 = vcmp.eq.s32.totalorder %v302_v38, %v710_v35  ;;  %v377_v9 = vsub.f32 1.0, %v754_v12  ;;  %v441_v44 = vmax.f32 %v564_v62, 0.0 }
 0x10e   :  { %v495_v27 = vadd.f32 %v494_v21, %v463_v23  ;;  %v471_v6 = vsel %vm343_vm14, %v375_v60, %v439_v42  ;;  %vm344_vm15 = vcmp.eq.s32.totalorder %v305_v63, %v708_v34  ;;  %vm345_vm0 = vcmp.eq.s32.totalorder %v305_v63, %v710_v35 }
 0x10f   :  { %v472_v10 = vsel %vm344_vm15, %v376_v3, %v440_v61  ;;  %v473_v14 = vsel %vm345_vm0, %v377_v9, %v441_v44 }
 0x110   :  { %v496_v32 = vadd.f32 %v495_v27, %v464_v28 }
 0x112   :  { %v497_v43 = vadd.f32 %v496_v32, %v465_v36 }
 0x114   :  { %v498_v48 = vadd.f32 %v497_v43, %v466_v45 }
 0x116   :  { %v499_v54 = vadd.f32 %v498_v48, %v467_v51 }
 0x118   :  { %v500_v58 = vadd.f32 %v499_v54, %v468_v55 }
 0x11a   :  { %v501_v41 = vadd.f32 %v500_v58, %v469_v59 }
 0x11c   :  { %v502_v5 = vadd.f32 %v501_v41, %v470_v2 }
 0x11e   :  { %v503_v1 = vadd.f32 %v502_v5, %v471_v6 }
 0x120   :  { %v504_v11 = vadd.f32 %v503_v1, %v472_v10 }
 0x122   :  { %v505_v15 = vadd.f32 %v504_v11, %v473_v14 }
 0x124   :  { %508 = vst [vmem:[%s815_s4] sm:$0xff] %v505_v15 }

</bundles_post_ra>
